<compile_context>
chip_gen: v5e
topology: v5e:2x2
jax: 0.10.0
libtpu: 0.0.40
codegen_flags: <defaults>
</compile_context>

<pallas_src>
import functools

import jax
import jax.numpy as jnp
from jax.experimental import pallas as pl
from jax.experimental.pallas import tpu as pltpu

_LANES = 128
_SUBLANES = 8
_VMEM_LIMIT_BYTES = 32 * 1024 * 1024


def _device_kind() -> str:
    try:
        return jax.devices()[0].device_kind.lower()
    except Exception:  # pragma: no cover - defensive
        return ""


def _default_num_splits() -> int:
    kind = _device_kind()
    # Only chips with two TensorCores per JAX device benefit from the extra
    # "parallel" core-split axis; on single-TC chips it is pure overhead.
    return 2 if any(tag in kind for tag in ("v4", "v5p", "v7")) else 1


def _default_max_tile_rows() -> int:
    kind = _device_kind()
    # v5e's scoped-VMEM default is 16 MiB; 4096-row blocks keep the two
    # double-buffered inputs at ~8 MiB.  Newer chips take 8192-row blocks
    # (~16 MiB double-buffered) to amortize the ~0.35 us per-step overhead.
    if "v5 lite" in kind or "v5e" in kind:
        return 4096
    return 8192


def _wbce_kernel(x_ref, t_ref, out_ref,
                 cnt_pos_acc, cnt_neg_acc, bce_pos_acc, bce_neg_acc,
                 *, rows, tile_rows, acc_rows, inner_steps, needs_mask):
    p = pl.program_id(0)   # core-split axis ("parallel" on multi-TC chips)
    s = pl.program_id(1)   # streaming / reduction axis ("arbitrary")

    @pl.when(s == 0)
    def _init():
        cnt_pos_acc[...] = jnp.zeros_like(cnt_pos_acc)
        cnt_neg_acc[...] = jnp.zeros_like(cnt_neg_acc)
        bce_pos_acc[...] = jnp.zeros_like(bce_pos_acc)
        bce_neg_acc[...] = jnp.zeros_like(bce_neg_acc)

    blk = p * inner_steps + s          # logical block (may overhang; masked)
    row0 = blk * tile_rows

    x = x_ref[...]                     # (tile_rows, 128) f32 logits
    t = t_ref[...]                     # (tile_rows, 128) f32 targets

    # Stable softplus(x) = max(x, 0) + log1p(exp(-|x|))   (EUP ops; hidden).
    # BCE-with-logits:  t == 1 -> softplus(x) - x ; t == 0 -> softplus(x).
    sp = jnp.maximum(x, 0.0) + jnp.log1p(jnp.exp(-jnp.abs(x)))

    def _fold(plane):
        # Layout-preserving partial reduction to (acc_rows, 128): pure VPU
        # adds across vregs; no per-vreg accumulator load/store traffic.
        if tile_rows == acc_rows:
            return plane
        return plane.reshape(-1, acc_rows, _LANES).sum(axis=0)

    def _accumulate(pos, neg):
        cnt_pos_acc[...] += _fold(pos.astype(jnp.float32))
        cnt_neg_acc[...] += _fold(neg.astype(jnp.float32))
        # Keep selects (not mask-multiplies): garbage rows in partial /
        # clamped blocks may hold inf/NaN and 0 * inf would poison the sums.
        bce_pos_acc[...] += _fold(jnp.where(pos, sp - x, 0.0))
        bce_neg_acc[...] += _fold(jnp.where(neg, sp, 0.0))

    pos_u = t == 1.0
    neg_u = t == 0.0

    if needs_mask:
        is_full = row0 + tile_rows <= rows      # block entirely in range?

        @pl.when(is_full)
        def _interior():                        # fast path: no row mask
            _accumulate(pos_u, neg_u)

        @pl.when(jnp.logical_not(is_full))
        def _boundary():                        # partial / clamped overflow
            row_ids = jax.lax.broadcasted_iota(jnp.int32, (tile_rows, 1), 0)
            valid = row_ids < (rows - row0)
            _accumulate(jnp.logical_and(pos_u, valid),
                        jnp.logical_and(neg_u, valid))
    else:
        _accumulate(pos_u, neg_u)

    # Deferred XLU reductions + single lane-dense output write, last step only.
    @pl.when(s == inner_steps - 1)
    def _finalize():
        s_pos = jnp.sum(cnt_pos_acc[...])
        s_neg = jnp.sum(cnt_neg_acc[...])
        s_bp = jnp.sum(bce_pos_acc[...])
        s_bn = jnp.sum(bce_neg_acc[...])
        lane = jax.lax.broadcasted_iota(jnp.int32, (1, _SUBLANES, _LANES), 2)
        vec = jnp.where(lane == 0, s_pos, 0.0)
        vec = vec + jnp.where(lane == 1, s_neg, 0.0)
        vec = vec + jnp.where(lane == 2, s_bp, 0.0)
        vec = vec + jnp.where(lane == 3, s_bn, 0.0)
        out_ref[...] = vec


@functools.partial(jax.jit, static_argnames=("coeff_bce", "max_tile_rows"))
def boundary_loss(bd_pre, bd_gt, coeff_bce=20.0, max_tile_rows=None):
    n, c, h, w = bd_pre.shape
    numel = n * c * h * w

    # permute(0,2,3,1).view(1,-1) has identical element order to a flat
    # reshape when c == 1 (the only case where the torch code's shapes match).
    if c == 1:
        x = bd_pre.reshape(-1).astype(jnp.float32)
    else:
        x = jnp.transpose(bd_pre, (0, 2, 3, 1)).reshape(-1).astype(jnp.float32)
    # Targets streamed directly (no int8 code pre-pass); astype is a no-op
    # for f32 inputs.
    t = bd_gt.reshape(-1).astype(jnp.float32)

    # Tiny pad (< 128 elements) only when numel is not lane-aligned; gt is
    # padded with -1 so padded elements are neither positive nor negative.
    pad = (-numel) % _LANES
    if pad:
        x = jnp.pad(x, (0, pad))
        t = jnp.pad(t, (0, pad), constant_values=-1.0)

    rows = (numel + pad) // _LANES
    if max_tile_rows is None:
        max_tile_rows = _default_max_tile_rows()
    tile_rows = min(max_tile_rows, rows)
    if tile_rows % _SUBLANES and rows > _SUBLANES:
        # Keep (8,128)-aligned blocks; the ragged tail is masked in-kernel.
        tile_rows = (tile_rows // _SUBLANES) * _SUBLANES
    acc_rows = _SUBLANES if tile_rows % _SUBLANES == 0 else tile_rows

    X = x.reshape(rows, _LANES)
    T = t.reshape(rows, _LANES)

    num_splits = _default_num_splits()
    total_blocks = -(-rows // tile_rows)
    inner_steps = -(-total_blocks // num_splits)
    needs_mask = (rows % tile_rows != 0) or (num_splits * inner_steps != total_blocks)
    grid = (num_splits, inner_steps)

    def in_index_map(p, s):
        # Clamp logical block indices past the end onto the last real block;
        # those rows are masked out inside the kernel.
        return (jnp.minimum(p * inner_steps + s, total_blocks - 1), 0)

    in_spec = pl.BlockSpec((tile_rows, _LANES), in_index_map)

    out = pl.pallas_call(
        functools.partial(_wbce_kernel, rows=rows, tile_rows=tile_rows,
                          acc_rows=acc_rows, inner_steps=inner_steps,
                          needs_mask=needs_mask),
        out_shape=jax.ShapeDtypeStruct(
            (num_splits, _SUBLANES, _LANES), jnp.float32),
        grid=grid,
        in_specs=[in_spec, in_spec],
        out_specs=pl.BlockSpec((1, _SUBLANES, _LANES), lambda p, s: (p, 0, 0)),
        scratch_shapes=[pltpu.VMEM((acc_rows, _LANES), jnp.float32)
                        for _ in range(4)],
        compiler_params=pltpu.CompilerParams(
            dimension_semantics=(("parallel", "arbitrary") if num_splits > 1
                                 else ("arbitrary", "arbitrary")),
            vmem_limit_bytes=_VMEM_LIMIT_BYTES),
    )(X, T)

    # Epilogue: combine per-core partials (lanes 0..3 of sublane 0).
    res = out[:, 0, :]                        # (num_splits, 128)
    pos_num = jnp.sum(res[:, 0])
    neg_num = jnp.sum(res[:, 1])
    bce_pos = jnp.sum(res[:, 2])
    bce_neg = jnp.sum(res[:, 3])

    sum_num = pos_num + neg_num
    # weight[pos] = neg/sum, weight[neg] = pos/sum, else 0; 'mean' over numel.
    weighted_sum = (neg_num / sum_num) * bce_pos + (pos_num / sum_num) * bce_neg
    loss = weighted_sum / jnp.float32(numel)
    return coeff_bce * loss


def _reference_loss(bd_pre, bd_gt, coeff_bce=20.0):
    x = jnp.transpose(bd_pre, (0, 2, 3, 1)).reshape(-1).astype(jnp.float32)
    t = bd_gt.reshape(-1).astype(jnp.float32)
    pos = t == 1.0
    neg = t == 0.0
    pos_num = jnp.sum(pos.astype(jnp.float32))
    neg_num = jnp.sum(neg.astype(jnp.float32))
    sum_num = pos_num + neg_num
    weight = jnp.where(pos, neg_num / sum_num,
                       jnp.where(neg, pos_num / sum_num, 0.0))
    bce = jnp.maximum(x, 0.0) - x * t + jnp.log1p(jnp.exp(-jnp.abs(x)))
    return coeff_bce * jnp.mean(weight * bce)


if __name__ == "__main__":
    key = jax.random.PRNGKey(0)
    k1, k2, k3, k4, k5, k6 = jax.random.split(key, 6)

    # 1) Small boundary head (single channel), lane-aligned numel.
    n, c, h, w = 2, 1, 16, 16
    bd_pre = jax.random.normal(k1, (n, c, h, w), dtype=jnp.float32)
    bd_gt = jax.random.bernoulli(k2, p=0.2, shape=(n, h, w)).astype(jnp.float32)
    loss = jax.block_until_ready(boundary_loss(bd_pre, bd_gt, coeff_bce=20.0))
    ref = _reference_loss(bd_pre, bd_gt, coeff_bce=20.0)
    assert jnp.allclose(loss, ref, rtol=1e-5, atol=1e-5), (loss, ref)

    # 2) Non-128-aligned numel: exercises the (<128-element) tail pad path.
    n2, h2, w2 = 1, 20, 18
    bd_pre2 = jax.random.normal(k3, (n2, 1, h2, w2), dtype=jnp.float32)
    bd_gt2 = jax.random.bernoulli(k4, p=0.3, shape=(n2, h2, w2)).astype(jnp.float32)
    loss2 = jax.block_until_ready(boundary_loss(bd_pre2, bd_gt2, coeff_bce=20.0))
    ref2 = _reference_loss(bd_pre2, bd_gt2, coeff_bce=20.0)
    assert jnp.allclose(loss2, ref2, rtol=1e-5, atol=1e-5), (loss2, ref2)

    # 3) Force multiple blocks with a ragged last block: exercises the
    #    in-kernel row mask / interior fast-path branches.
    n3, h3, w3 = 1, 40, 64
    bd_pre3 = jax.random.normal(k5, (n3, 1, h3, w3), dtype=jnp.float32)
    bd_gt3 = jax.random.bernoulli(k6, p=0.25, shape=(n3, h3, w3)).astype(jnp.float32)
    loss3 = jax.block_until_ready(
        boundary_loss(bd_pre3, bd_gt3, coeff_bce=20.0, max_tile_rows=8))
    ref3 = _reference_loss(bd_pre3, bd_gt3, coeff_bce=20.0)
    assert jnp.allclose(loss3, ref3, rtol=1e-5, atol=1e-5), (loss3, ref3)

    print("KERNEL_OK")
</pallas_src>

<mosaic_0001>
module attributes {stable_mosaic.version = 11 : i64} {
  func.func @_wbce_kernel(%arg0: i32, %arg1: i32, %arg2: memref<4x128xf32, #tpu.memory_space<vmem>>, %arg3: memref<4x128xf32, #tpu.memory_space<vmem>>, %arg4: memref<1x8x128xf32, #tpu.memory_space<vmem>>, %arg5: memref<4x128xf32, #tpu.memory_space<vmem>>, %arg6: memref<4x128xf32, #tpu.memory_space<vmem>>, %arg7: memref<4x128xf32, #tpu.memory_space<vmem>>, %arg8: memref<4x128xf32, #tpu.memory_space<vmem>>) attributes {dimension_semantics = [#tpu.dimension_semantics<arbitrary>, #tpu.dimension_semantics<arbitrary>], iteration_bounds = array<i64: 1, 1>, scalar_prefetch = 0 : i64, scratch_operands = 4 : i64, tpu.core_type = #tpu.core_type<tc>, window_params = [{transform_indices = @transform_0, window_bounds = array<i64: 4, 128>}, {transform_indices = @transform_1, window_bounds = array<i64: 4, 128>}, {transform_indices = @transform_2, window_bounds = array<i64: 1, 8, 128>}]} {
    %c0_i32 = arith.constant 0 : i32
    %0 = arith.cmpi eq, %arg1, %c0_i32 : i32
    %1 = arith.extui %0 : i1 to i32
    %c0_i32_0 = arith.constant 0 : i32
    %2 = arith.cmpi ne, %1, %c0_i32_0 : i32
    scf.if %2 {
      %cst_27 = arith.constant 0.000000e+00 : f32
      %41 = vector.broadcast %cst_27 : f32 to vector<4x128xf32>
      %c0_28 = arith.constant 0 : index
      %c0_29 = arith.constant 0 : index
      %42 = vector.load %arg5[%c0_28, %c0_29] : memref<4x128xf32, #tpu.memory_space<vmem>>, vector<4x128xf32>
      tpu.vector_store %arg5[%c0_28, %c0_29], %41 {strides = array<i32>} : memref<4x128xf32, #tpu.memory_space<vmem>>, vector<4x128xf32>,
      %cst_30 = arith.constant 0.000000e+00 : f32
      %43 = vector.broadcast %cst_30 : f32 to vector<4x128xf32>
      %c0_31 = arith.constant 0 : index
      %c0_32 = arith.constant 0 : index
      %44 = vector.load %arg6[%c0_31, %c0_32] : memref<4x128xf32, #tpu.memory_space<vmem>>, vector<4x128xf32>
      tpu.vector_store %arg6[%c0_31, %c0_32], %43 {strides = array<i32>} : memref<4x128xf32, #tpu.memory_space<vmem>>, vector<4x128xf32>,
      %cst_33 = arith.constant 0.000000e+00 : f32
      %45 = vector.broadcast %cst_33 : f32 to vector<4x128xf32>
      %c0_34 = arith.constant 0 : index
      %c0_35 = arith.constant 0 : index
      %46 = vector.load %arg7[%c0_34, %c0_35] : memref<4x128xf32, #tpu.memory_space<vmem>>, vector<4x128xf32>
      tpu.vector_store %arg7[%c0_34, %c0_35], %45 {strides = array<i32>} : memref<4x128xf32, #tpu.memory_space<vmem>>, vector<4x128xf32>,
      %cst_36 = arith.constant 0.000000e+00 : f32
      %47 = vector.broadcast %cst_36 : f32 to vector<4x128xf32>
      %c0_37 = arith.constant 0 : index
      %c0_38 = arith.constant 0 : index
      %48 = vector.load %arg8[%c0_37, %c0_38] : memref<4x128xf32, #tpu.memory_space<vmem>>, vector<4x128xf32>
      tpu.vector_store %arg8[%c0_37, %c0_38], %47 {strides = array<i32>} : memref<4x128xf32, #tpu.memory_space<vmem>>, vector<4x128xf32>,
    } else {
    }
    %c0 = arith.constant 0 : index
    %c0_1 = arith.constant 0 : index
    %3 = vector.load %arg2[%c0, %c0_1] : memref<4x128xf32, #tpu.memory_space<vmem>>, vector<4x128xf32>
    %c0_2 = arith.constant 0 : index
    %c0_3 = arith.constant 0 : index
    %4 = vector.load %arg3[%c0_2, %c0_3] : memref<4x128xf32, #tpu.memory_space<vmem>>, vector<4x128xf32>
    %cst = arith.constant 0.000000e+00 : f32
    %5 = vector.broadcast %cst : f32 to vector<4x128xf32>
    %6 = arith.maximumf %3, %5 : vector<4x128xf32>
    %7 = math.absf %3 : vector<4x128xf32>
    %cst_4 = arith.constant 0.000000e+00 : f32
    %8 = vector.broadcast %cst_4 : f32 to vector<4x128xf32>
    %9 = arith.subf %8, %7 : vector<4x128xf32>
    %10 = math.exp %9 : vector<4x128xf32>
    %11 = math.log1p %10 : vector<4x128xf32>
    %12 = arith.addf %6, %11 : vector<4x128xf32>
    %cst_5 = arith.constant 1.000000e+00 : f32
    %13 = vector.broadcast %cst_5 : f32 to vector<4x128xf32>
    %14 = arith.cmpf oeq, %4, %13 : vector<4x128xf32>
    %cst_6 = arith.constant 0.000000e+00 : f32
    %15 = vector.broadcast %cst_6 : f32 to vector<4x128xf32>
    %16 = arith.cmpf oeq, %4, %15 : vector<4x128xf32>
    %c0_7 = arith.constant 0 : index
    %c0_8 = arith.constant 0 : index
    %17 = vector.load %arg5[%c0_7, %c0_8] : memref<4x128xf32, #tpu.memory_space<vmem>>, vector<4x128xf32>
    %18 = arith.extui %14 : vector<4x128xi1> to vector<4x128xi32>
    %19 = arith.sitofp %18 : vector<4x128xi32> to vector<4x128xf32>
    %20 = arith.addf %17, %19 : vector<4x128xf32>
    %c0_9 = arith.constant 0 : index
    %c0_10 = arith.constant 0 : index
    %21 = vector.load %arg5[%c0_9, %c0_10] : memref<4x128xf32, #tpu.memory_space<vmem>>, vector<4x128xf32>
    tpu.vector_store %arg5[%c0_9, %c0_10], %20 {strides = array<i32>} : memref<4x128xf32, #tpu.memory_space<vmem>>, vector<4x128xf32>,
    %c0_11 = arith.constant 0 : index
    %c0_12 = arith.constant 0 : index
    %22 = vector.load %arg6[%c0_11, %c0_12] : memref<4x128xf32, #tpu.memory_space<vmem>>, vector<4x128xf32>
    %23 = arith.extui %16 : vector<4x128xi1> to vector<4x128xi32>
    %24 = arith.sitofp %23 : vector<4x128xi32> to vector<4x128xf32>
    %25 = arith.addf %22, %24 : vector<4x128xf32>
    %c0_13 = arith.constant 0 : index
    %c0_14 = arith.constant 0 : index
    %26 = vector.load %arg6[%c0_13, %c0_14] : memref<4x128xf32, #tpu.memory_space<vmem>>, vector<4x128xf32>
    tpu.vector_store %arg6[%c0_13, %c0_14], %25 {strides = array<i32>} : memref<4x128xf32, #tpu.memory_space<vmem>>, vector<4x128xf32>,
    %c0_15 = arith.constant 0 : index
    %c0_16 = arith.constant 0 : index
    %27 = vector.load %arg7[%c0_15, %c0_16] : memref<4x128xf32, #tpu.memory_space<vmem>>, vector<4x128xf32>
    %28 = arith.subf %12, %3 : vector<4x128xf32>
    %cst_17 = arith.constant 0.000000e+00 : f32
    %29 = vector.broadcast %cst_17 : f32 to vector<4x128xf32>
    %30 = arith.select %14, %28, %29 : vector<4x128xi1>, vector<4x128xf32>
    %31 = arith.addf %27, %30 : vector<4x128xf32>
    %c0_18 = arith.constant 0 : index
    %c0_19 = arith.constant 0 : index
    %32 = vector.load %arg7[%c0_18, %c0_19] : memref<4x128xf32, #tpu.memory_space<vmem>>, vector<4x128xf32>
    tpu.vector_store %arg7[%c0_18, %c0_19], %31 {strides = array<i32>} : memref<4x128xf32, #tpu.memory_space<vmem>>, vector<4x128xf32>,
    %c0_20 = arith.constant 0 : index
    %c0_21 = arith.constant 0 : index
    %33 = vector.load %arg8[%c0_20, %c0_21] : memref<4x128xf32, #tpu.memory_space<vmem>>, vector<4x128xf32>
    %cst_22 = arith.constant 0.000000e+00 : f32
    %34 = vector.broadcast %cst_22 : f32 to vector<4x128xf32>
    %35 = arith.select %16, %12, %34 : vector<4x128xi1>, vector<4x128xf32>
    %36 = arith.addf %33, %35 : vector<4x128xf32>
    %c0_23 = arith.constant 0 : index
    %c0_24 = arith.constant 0 : index
    %37 = vector.load %arg8[%c0_23, %c0_24] : memref<4x128xf32, #tpu.memory_space<vmem>>, vector<4x128xf32>
    tpu.vector_store %arg8[%c0_23, %c0_24], %36 {strides = array<i32>} : memref<4x128xf32, #tpu.memory_space<vmem>>, vector<4x128xf32>,
    %c0_i32_25 = arith.constant 0 : i32
    %38 = arith.cmpi eq, %arg1, %c0_i32_25 : i32
    %39 = arith.extui %38 : i1 to i32
    %c0_i32_26 = arith.constant 0 : i32
    %40 = arith.cmpi ne, %39, %c0_i32_26 : i32
    scf.if %40 {
      %c0_27 = arith.constant 0 : index
      %c0_28 = arith.constant 0 : index
      %41 = vector.load %arg5[%c0_27, %c0_28] : memref<4x128xf32, #tpu.memory_space<vmem>>, vector<4x128xf32>
      %42 = vector.shape_cast %41 : vector<4x128xf32> to vector<1x4x128xf32>
      %cst_29 = arith.constant dense<0.000000e+00> : vector<1xf32>
      %43 = vector.multi_reduction <add>, %42, %cst_29 [1, 2] : vector<1x4x128xf32> to vector<1xf32>
      %44 = vector.shape_cast %43 : vector<1xf32> to vector<1x1x1xf32>
      %45 = vector.extract %44[0, 0, 0] : f32 from vector<1x1x1xf32>
      %c0_30 = arith.constant 0 : index
      %c0_31 = arith.constant 0 : index
      %46 = vector.load %arg6[%c0_30, %c0_31] : memref<4x128xf32, #tpu.memory_space<vmem>>, vector<4x128xf32>
      %47 = vector.shape_cast %46 : vector<4x128xf32> to vector<1x4x128xf32>
      %cst_32 = arith.constant dense<0.000000e+00> : vector<1xf32>
      %48 = vector.multi_reduction <add>, %47, %cst_32 [1, 2] : vector<1x4x128xf32> to vector<1xf32>
      %49 = vector.shape_cast %48 : vector<1xf32> to vector<1x1x1xf32>
      %50 = vector.extract %49[0, 0, 0] : f32 from vector<1x1x1xf32>
      %c0_33 = arith.constant 0 : index
      %c0_34 = arith.constant 0 : index
      %51 = vector.load %arg7[%c0_33, %c0_34] : memref<4x128xf32, #tpu.memory_space<vmem>>, vector<4x128xf32>
      %52 = vector.shape_cast %51 : vector<4x128xf32> to vector<1x4x128xf32>
      %cst_35 = arith.constant dense<0.000000e+00> : vector<1xf32>
      %53 = vector.multi_reduction <add>, %52, %cst_35 [1, 2] : vector<1x4x128xf32> to vector<1xf32>
      %54 = vector.shape_cast %53 : vector<1xf32> to vector<1x1x1xf32>
      %55 = vector.extract %54[0, 0, 0] : f32 from vector<1x1x1xf32>
      %c0_36 = arith.constant 0 : index
      %c0_37 = arith.constant 0 : index
      %56 = vector.load %arg8[%c0_36, %c0_37] : memref<4x128xf32, #tpu.memory_space<vmem>>, vector<4x128xf32>
      %57 = vector.shape_cast %56 : vector<4x128xf32> to vector<1x4x128xf32>
      %cst_38 = arith.constant dense<0.000000e+00> : vector<1xf32>
      %58 = vector.multi_reduction <add>, %57, %cst_38 [1, 2] : vector<1x4x128xf32> to vector<1xf32>
      %59 = vector.shape_cast %58 : vector<1xf32> to vector<1x1x1xf32>
      %60 = vector.extract %59[0, 0, 0] : f32 from vector<1x1x1xf32>
      %61 = tpu.iota {dimensions = array<i32: 2>} : vector<1x8x128xi32>
      %c0_i32_39 = arith.constant 0 : i32
      %62 = vector.broadcast %c0_i32_39 : i32 to vector<1x8x128xi32>
      %63 = arith.cmpi eq, %61, %62 : vector<1x8x128xi32>
      %cst_40 = arith.constant 0.000000e+00 : f32
      %64 = vector.broadcast %45 : f32 to vector<1x8x128xf32>
      %65 = vector.broadcast %cst_40 : f32 to vector<1x8x128xf32>
      %66 = arith.select %63, %64, %65 : vector<1x8x128xi1>, vector<1x8x128xf32>
      %c1_i32 = arith.constant 1 : i32
      %67 = vector.broadcast %c1_i32 : i32 to vector<1x8x128xi32>
      %68 = arith.cmpi eq, %61, %67 : vector<1x8x128xi32>
      %cst_41 = arith.constant 0.000000e+00 : f32
      %69 = vector.broadcast %50 : f32 to vector<1x8x128xf32>
      %70 = vector.broadcast %cst_41 : f32 to vector<1x8x128xf32>
      %71 = arith.select %68, %69, %70 : vector<1x8x128xi1>, vector<1x8x128xf32>
      %72 = arith.addf %66, %71 : vector<1x8x128xf32>
      %c2_i32 = arith.constant 2 : i32
      %73 = vector.broadcast %c2_i32 : i32 to vector<1x8x128xi32>
      %74 = arith.cmpi eq, %61, %73 : vector<1x8x128xi32>
      %cst_42 = arith.constant 0.000000e+00 : f32
      %75 = vector.broadcast %55 : f32 to vector<1x8x128xf32>
      %76 = vector.broadcast %cst_42 : f32 to vector<1x8x128xf32>
      %77 = arith.select %74, %75, %76 : vector<1x8x128xi1>, vector<1x8x128xf32>
      %78 = arith.addf %72, %77 : vector<1x8x128xf32>
      %c3_i32 = arith.constant 3 : i32
      %79 = vector.broadcast %c3_i32 : i32 to vector<1x8x128xi32>
      %80 = arith.cmpi eq, %61, %79 : vector<1x8x128xi32>
      %cst_43 = arith.constant 0.000000e+00 : f32
      %81 = vector.broadcast %60 : f32 to vector<1x8x128xf32>
      %82 = vector.broadcast %cst_43 : f32 to vector<1x8x128xf32>
      %83 = arith.select %80, %81, %82 : vector<1x8x128xi1>, vector<1x8x128xf32>
      %84 = arith.addf %78, %83 : vector<1x8x128xf32>
      %c0_44 = arith.constant 0 : index
      %c0_45 = arith.constant 0 : index
      %c0_46 = arith.constant 0 : index
      %85 = vector.load %arg4[%c0_44, %c0_45, %c0_46] : memref<1x8x128xf32, #tpu.memory_space<vmem>>, vector<1x8x128xf32>
      tpu.vector_store %arg4[%c0_44, %c0_45, %c0_46], %84 {strides = array<i32>} : memref<1x8x128xf32, #tpu.memory_space<vmem>>, vector<1x8x128xf32>,
    } else {
    }
    return
  }
  func.func @transform_0(%arg0: i32, %arg1: i32) -> (i32, i32) {
    %c1_i32 = arith.constant 1 : i32
    %0 = arith.muli %arg0, %c1_i32 : i32
    %1 = arith.addi %0, %arg1 : i32
    %c0_i32 = arith.constant 0 : i32
    %2 = arith.minsi %1, %c0_i32 : i32
    %c0_i32_0 = arith.constant 0 : i32
    %c0_i32_1 = arith.constant 0 : i32
    return %2, %c0_i32_0 : i32, i32
  }
  func.func @transform_1(%arg0: i32, %arg1: i32) -> (i32, i32) {
    %c1_i32 = arith.constant 1 : i32
    %0 = arith.muli %arg0, %c1_i32 : i32
    %1 = arith.addi %0, %arg1 : i32
    %c0_i32 = arith.constant 0 : i32
    %2 = arith.minsi %1, %c0_i32 : i32
    %c0_i32_0 = arith.constant 0 : i32
    %c0_i32_1 = arith.constant 0 : i32
    return %2, %c0_i32_0 : i32, i32
  }
  func.func @transform_2(%arg0: i32, %arg1: i32) -> (i32, i32, i32) {
    %c0_i32 = arith.constant 0 : i32
    %c0_i32_0 = arith.constant 0 : i32
    %c0_i32_1 = arith.constant 0 : i32
    return %arg0, %c0_i32, %c0_i32_0 : i32, i32, i32
  }
}

</mosaic_0001>

<bundles_post_ra>
// kernel: boundary_loss.1
= control target key start
LH: loop header
LB: loop body
LE: loop exit
PB: predicated region body
PF: predicated region fallthrough
CT: control target
= control target key end

     0   :  { %v208_v0 = vmov 0.0   ;;  %vm115_vm2 = vcmask 1043456   ;;  %s241_s1 = inlined_call_operand.vmem [shape: f32[4,128], index: 1, kind: input, shape index: {}]   ;;  %s242_s0 = inlined_call_operand.vmem [shape: f32[4,128], index: 0, kind: input, shape index: {}]   ;;  %s243_s2 = inlined_call_operand.vmem [shape: f32[1,8,128], index: 2, kind: output, shape index: {}]  }
   0x1   :  { %69 = vst [vmem:[#allocation2] sm:$0xf] %v208_v0  ;;  %v74_v1 = vld [vmem:[%s241_s1] sm:$0xf] }
   0x2   :  { %v73_v2 = vld [vmem:[%s242_s0] sm:$0xf]  ;;  %70 = vst [vmem:[#allocation3] sm:$0xf] %v208_v0  ;;  %vm90_vm0 = vcmp.eq.f32.partialorder %v74_v1, 1.0  ;;  %vm91_vm1 = vcmp.eq.f32.partialorder %v74_v1, 0.0 }
   0x3   :  { %71 = vst [vmem:[#allocation4] sm:$0xf] %v208_v0  ;;  %v76_v3 = vand.u32 2147483647, %v73_v2  ;;  %v193_v5 = vsel %vm90_vm0, 1.0, %v208_v0  ;;  %v194_v6 = vsel %vm91_vm1, 1.0, %v208_v0 }
   0x4   :  { %72 = vst [vmem:[#allocation5] sm:$0xf] %v208_v0  ;;  %v75_v22 = vmax.f32 %v73_v2, 0.0 }
   0x5   :  { %v77_v4 = vsub.f32 0.0, %v76_v3 }
   0x7   :  { %v78_v7 = vmul.f32 1.442695, %v77_v4 }
   0x8   :  { %v92_v8 = vld [vmem:[#allocation2] sm:$0xf] }
   0x9   :  { %v95_v9 = vadd.f32 %v193_v5, %v92_v8  ;;  %v97_v10 = vld [vmem:[#allocation3] sm:$0xf]  ;;  %204 = vpow2.f32 %v78_v7 }
   0xa   :  { %v100_v11 = vadd.f32 %v194_v6, %v97_v10  ;;  %v102_v28 = vld [vmem:[#allocation4] sm:$0xf] }
   0xb   :  { %96 = vst [vmem:[#allocation2] sm:$0xf] %v95_v9  ;;  %v107_v27 = vld [vmem:[#allocation5] sm:$0xf] }
   0xc   :  { %101 = vst [vmem:[#allocation3] sm:$0xf] %v100_v11 }
   0xf   :  { %v205_v12 = vpop.eup %204 }
  0x10   :  { %v80_v13 = vadd.f32 1.0, %v205_v12  ;;  %v83_v14 = vmul.f32 -0.5, %v205_v12  ;;  %v86_v18 = vand.u32 2147483647, %v205_v12 }
  0x12   :  { %v114_v15 = vld [vmem:[#allocation2] sm:$0xf]  ;;  %206 = vlog2.f32 %v80_v13  ;;  %v84_v17 = vadd.f32 1.0, %v83_v14  ;;  %vm87_vm3 = vcmp.lt.f32.partialorder %v86_v18, 0.0004427343 }
  0x13   :  { %v116_v16 = vsel %vm115_vm2, %v114_v15, 0.0  ;;  %v126_v19 = vld [vmem:[#allocation3] sm:$0xf] }
  0x14   :  { %117 = vadd.xlane.f32.xlu0 %v116_v16  ;;  %v85_v20 = vmul.f32 %v205_v12, %v84_v17  ;;  %v127_v23 = vsel %vm115_vm2, %v126_v19, 0.0 }
  0x18   :  { %v207_v21 = vpop.eup %206 }
  0x19   :  { %v82_v24 = vmul.f32 0.6931472, %v207_v21 }
  0x1b   :  { %v88_v25 = vsel %vm87_vm3, %v85_v20, %v82_v24 }
  0x1c   :  { %128 = vadd.xlane.f32.xlu0 %v127_v23  ;;  %v89_v26 = vadd.f32 %v88_v25, %v75_v22 }
  0x1e   :  { %v103_v29 = vsub.f32 %v89_v26, %v73_v2  ;;  %v108_v30 = vsel %vm91_vm1, %v89_v26, 0.0  ;;  %v159_v2 = vlaneseq }
  0x1f   :  { %v109_v31 = vadd.f32 %v108_v30, %v107_v27 }
  0x20   :  { %v104_v32 = vsel %vm90_vm0, %v103_v29, 0.0  ;;  %v160_v3 = vand.u32 127, %v159_v2 }
  0x21   :  { %v105_v33 = vadd.f32 %v104_v32, %v102_v28  ;;  %110 = vst [vmem:[#allocation5] sm:$0xf] %v109_v31 }
  0x22   :  { %vm161_vm4 = vcmp.eq.s32.totalorder %v160_v3, 0  ;;  %vm164_vm5 = vcmp.eq.s32.totalorder %v160_v3, 1  ;;  %vm168_vm6 = vcmp.eq.s32.totalorder %v160_v3, 2  ;;  %vm172_vm7 = vcmp.eq.s32.totalorder %v160_v3, 3 }
  0x23   :  { %106 = vst [vmem:[#allocation4] sm:$0xf] %v105_v33 }
  0x28   :  { %v148_v36 = vld [vmem:[#allocation5] sm:$0xf] }
  0x29   :  { %v149_v37 = vsel %vm115_vm2, %v148_v36, 0.0 }
  0x2a   :  { %v137_v34 = vld [vmem:[#allocation4] sm:$0xf] }
  0x2b   :  { %v138_v35 = vsel %vm115_vm2, %v137_v34, 0.0 }
  0x2c   :  { %139 = vadd.xlane.f32.xlu1 %v138_v35 }
  0x34   :  { %150 = vadd.xlane.f32.xlu1 %v149_v37 }
  0x87   :  { %v118_v38 = vpop.xlane.xlu0 %117 }
  0x88   :  { %v119_v39 = vrot.slane %v118_v38, 4 }
  0x8a   :  { %v120_v40 = vadd.f32 %v119_v39, %v118_v38 }
  0x8c   :  { %v121_v41 = vrot.slane %v120_v40, 2 }
  0x8e   :  { %v122_v42 = vadd.f32 %v121_v41, %v120_v40 }
  0x8f   :  { %v129_v43 = vpop.xlane.xlu0 %128 }
  0x90   :  { %v130_v44 = vrot.slane %v129_v43, 4  ;;  %v123_v45 = vrot.slane %v122_v42, 1 }
  0x92   :  { %v131_v46 = vadd.f32 %v130_v44, %v129_v43  ;;  %v124_v47 = vadd.f32 %v123_v45, %v122_v42 }
  0x94   :  { %v132_v48 = vrot.slane %v131_v46, 2  ;;  %195 = vpush %v124_v47 }
  0x96   :  { %v133_v49 = vadd.f32 %v132_v48, %v131_v46 }
  0x98   :  { %v134_v50 = vrot.slane %v133_v49, 1 }
  0x9a   :  { %v135_v51 = vadd.f32 %v134_v50, %v133_v49 }
  0x9c   :  { %197 = vpush %v135_v51 }
  0x9f   :  { %v140_v52 = vpop.xlane.xlu1 %139 }
  0xa0   :  { %v141_v53 = vrot.slane %v140_v52, 4 }
  0xa2   :  { %v142_v54 = vadd.f32 %v141_v53, %v140_v52 }
  0xa4   :  { %v143_v55 = vrot.slane %v142_v54, 2 }
  0xa6   :  { %v144_v56 = vadd.f32 %v143_v55, %v142_v54 }
  0xa7   :  { %v151_v57 = vpop.xlane.xlu1 %150 }
  0xa8   :  { %v152_v58 = vrot.slane %v151_v57, 4  ;;  %v145_v59 = vrot.slane %v144_v56, 1 }
  0xaa   :  { %v153_v60 = vadd.f32 %v152_v58, %v151_v57  ;;  %v146_v61 = vadd.f32 %v145_v59, %v144_v56 }
  0xac   :  { %v154_v62 = vrot.slane %v153_v60, 2  ;;  %199 = vpush %v146_v61 }
  0xae   :  { %v155_v63 = vadd.f32 %v154_v62, %v153_v60 }
  0xb0   :  { %v156_v0 = vrot.slane %v155_v63, 1 }
  0xb2   :  { %v157_v1 = vadd.f32 %v156_v0, %v155_v63 }
  0xb4   :  { %201 = vpush %v157_v1 }
  0xc5   :  { %s196_s0 = spop %195 }
  0xc6   :  { %v162_v4 = vstv %s196_s0 }
  0xc7   :  { %v163_v7 = vsel %vm161_vm4, %v162_v4, 0.0 }
  0xcd   :  { %s198_s1 = spop %197 }
  0xce   :  { %v165_v5 = vstv %s198_s1 }
  0xcf   :  { %v166_v8 = vsel %vm164_vm5, %v165_v5, 0.0 }
  0xd0   :  { %v167_v10 = vadd.f32 %v166_v8, %v163_v7 }
  0xdd   :  { %s200_s13 = spop %199 }
  0xde   :  { %v169_v6 = vstv %s200_s13 }
  0xdf   :  { %v170_v9 = vsel %vm168_vm6, %v169_v6, 0.0 }
  0xe0   :  { %v171_v11 = vadd.f32 %v170_v9, %v167_v10 }
  0xe5   :  { %s202_s14 = spop %201 }
  0xe6   :  { %v173_v12 = vstv %s202_s14 }
  0xe7   :  { %v174_v13 = vsel %vm172_vm7, %v173_v12, 0.0 }
  0xe8   :  { %v175_v14 = vadd.f32 %v174_v13, %v171_v11 }
  0xea   :  { %176 = vst [vmem:[%s243_s2] sm:$0xff] %v175_v14 }

</bundles_post_ra>
